<compile_context>
chip_gen: v7x
topology: tpu7x:2x2x1
jax: 0.10.0
libtpu: 0.0.40
codegen_flags: <defaults>
</compile_context>

<pallas_src>
import math
from functools import partial

import jax
import jax.numpy as jnp
from jax.experimental import pallas as pl
from jax.experimental.pallas import tpu as pltpu

_FUSE_FIRST_LAYER_MAX_M = 8  # fuse Fourier encoding + layer 0 on the VPU for small M


def _round_up(n, m):
    return ((n + m - 1) // m) * m


def _dnn_kernel(inp_ref, w0_ref, b0_ref, w1_ref, b1_ref, w2_ref, b2_ref, out_ref,
                *, L, M, fuse_first_layer, mxu_precision):
    """One batch tile: fused Fourier encoding + 3-layer tanh MLP (transposed layout).

    inp_ref : [2, TM]        (row 0 = t, row 1 = x), batch on lanes
    wI_ref  : [out, in]      VMEM-resident across the whole grid
    bI_ref  : [out, 1]
    out_ref : [out_dim, TM]  lane-dense output block
    """
    t = inp_ref[0:1, :]                                    # [1, TM]
    x = inp_ref[1:2, :]                                    # [1, TM]
    w = 2.0 * math.pi / L

    def dense(h, w_ref, b_ref):
        # MXU matmul; f32 accumulation and f32 bias add.
        acc = jnp.dot(w_ref[...], h.astype(w_ref.dtype),
                      preferred_element_type=jnp.float32,
                      precision=mxu_precision)
        return acc + b_ref[...]

    if fuse_first_layer:
        # h1_pre = W0 @ enc + b0 computed with lane/sublane broadcasts on the VPU:
        #   enc columns: 0=t, 1=ones, 2..1+M=cos_k, 2+M..1+2M=sin_k
        # No concatenate, no K=(2+2M) MXU pass, no sub-8-sublane slabs.
        h1 = w0_ref[:, 0:1] * t + (w0_ref[:, 1:2] + b0_ref[...])          # [H1, TM]
        for k in range(1, M + 1):
            phase = (k * w) * x                                           # [1, TM]
            h1 = h1 + w0_ref[:, 1 + k:2 + k] * jnp.cos(phase)
            h1 = h1 + w0_ref[:, 1 + M + k:2 + M + k] * jnp.sin(phase)
    else:
        # General-M fallback: dense Fourier slab + MXU layer 0.
        k_col = (jax.lax.broadcasted_iota(jnp.int32, (M, 1), 0) + 1).astype(jnp.float32) * w
        phase = k_col * x                                                 # [M, TM]
        enc = jnp.concatenate(
            [t, jnp.ones_like(t), jnp.cos(phase), jnp.sin(phase)], axis=0)  # [2+2M, TM]
        h1 = dense(enc, w0_ref, b0_ref)

    h = jnp.tanh(h1)                                        # [H1, TM]
    h = jnp.tanh(dense(h, w1_ref, b1_ref))                  # [H2, TM]
    out_ref[...] = dense(h, w2_ref, b2_ref).astype(out_ref.dtype)


@partial(jax.jit,
         static_argnames=("L", "M", "block_rows", "compute_dtype", "mxu_precision"))
def _dnn_forward_jit(inp, params, L, M, block_rows, compute_dtype, mxu_precision):
    (w0, b0), (w1, b1), (w2, b2) = params
    N = inp.shape[0]
    out_dim = w2.shape[0]
    H1, H2 = w0.shape[0], w1.shape[0]
    enc_dim = 2 + 2 * M
    assert w0.shape[1] == enc_dim, "layer-0 input width must equal 2 + 2*M"
    assert block_rows % 128 == 0, "block_rows must be a multiple of 128 (lane width)"

    fuse_first_layer = M <= _FUSE_FIRST_LAYER_MAX_M
    is_f32 = jnp.dtype(compute_dtype) == jnp.dtype(jnp.float32)

    # Pre-cast MXU weights once in the wrapper (half the resident bytes in bf16 mode,
    # no per-grid-step VPU cast).  w0/b0 stay f32 when layer 0 is fused VPU math;
    # biases always stay f32 (added after the f32-accumulating dot).
    if not is_f32:
        w1 = w1.astype(compute_dtype)
        w2 = w2.astype(compute_dtype)
        if not fuse_first_layer:
            w0 = w0.astype(compute_dtype)

    # Row tile: multiple of 128 lanes.  Large tiles amortize the ~0.35 us per-grid-step
    # overhead (this kernel moves only ~12 B/row, so step overhead dominates at small
    # tiles); cap at ceil(N/2) so the "parallel" batch axis keeps >=2 tiles for v7x's
    # two TensorCores.  VMEM footprint is only a few MiB even at TM=32768, so no
    # vmem_limit_bytes override is needed at these tile sizes.
    TM = max(128, min(block_rows, _round_up(max((N + 1) // 2, 1), 128)))
    N_pad = _round_up(max(N, 1), TM)
    n_tiles = N_pad // TM

    # Layout plumbing fused into this jit: present batch on the lane axis.
    inp_T = jnp.asarray(inp, jnp.float32).T                # [2, N]
    if N_pad != N:
        inp_T = jnp.pad(inp_T, ((0, 0), (0, N_pad - N)))

    def resident(arr):
        # Full-array block, same block every grid step -> stays VMEM-resident.
        return pl.BlockSpec(arr.shape, lambda i: (0,) * arr.ndim)

    # Cheap-but-transcendental-heavy: steady state is bound by the single EUP port
    # (tanh on both hidden layers + cos/sin), not the MXU or DMA.
    cost = pl.CostEstimate(
        flops=2 * N_pad * (enc_dim * H1 + H1 * H2 + H2 * out_dim),
        transcendentals=N_pad * (H1 + H2 + 2 * M),
        bytes_accessed=N_pad * (2 + out_dim) * 4,
    )

    kernel = partial(_dnn_kernel, L=float(L), M=int(M),
                     fuse_first_layer=fuse_first_layer, mxu_precision=mxu_precision)

    out_T = pl.pallas_call(
        kernel,
        out_shape=jax.ShapeDtypeStruct((out_dim, N_pad), jnp.float32),
        grid=(n_tiles,),
        in_specs=[
            pl.BlockSpec((2, TM), lambda i: (0, i)),       # input tile, batch on lanes
            resident(w0), resident(b0),
            resident(w1), resident(b1),
            resident(w2), resident(b2),
        ],
        out_specs=pl.BlockSpec((out_dim, TM), lambda i: (0, i)),  # lane-dense output
        compiler_params=pltpu.CompilerParams(
            dimension_semantics=("parallel",),             # batch tiles across TCs (v7x)
        ),
        cost_estimate=cost,
    )(inp_T, w0, b0, w1, b1, w2, b2)

    return out_T[:, :N].T                                  # [N, out_dim]


def dnn_forward(inp, params, *, L=1.0, M=1, block_rows=8192,
                compute_dtype=jnp.float32, mxu_precision=None):
    """DNN forward pass with a batch-tiled Pallas TPU kernel (jitted end to end).

    inp:    [N, 2] float array ([:,0]=t, [:,1]=x)
    params: [(w0,b0),(w1,b1),(w2,b2)] with w [out,in], b [out,1] (PyTorch layout).
    mxu_precision: pass jax.lax.Precision.HIGHEST for strict-f32 matmuls on
      bf16-native MXUs; None keeps the backend default.
    """
    return _dnn_forward_jit(inp, params, L=L, M=M, block_rows=block_rows,
                            compute_dtype=compute_dtype, mxu_precision=mxu_precision)


def init_params(key, layers):
    """PyTorch-Linear-style init: U(-1/sqrt(fan_in), 1/sqrt(fan_in)).
    Weights stored [out_features, in_features], biases [out_features, 1]."""
    params = []
    for i in range(len(layers) - 1):
        fan_in, fan_out = layers[i], layers[i + 1]
        key, kw, kb = jax.random.split(key, 3)
        bound = 1.0 / math.sqrt(fan_in)
        w = jax.random.uniform(kw, (fan_out, fan_in), jnp.float32, -bound, bound)
        b = jax.random.uniform(kb, (fan_out, 1), jnp.float32, -bound, bound)
        params.append((w, b))
    return params


def reference_forward(inp, params, *, L=1.0, M=1):
    """Pure-JAX reference (row-major), for correctness checking."""
    t, x = inp[:, 0:1], inp[:, 1:2]
    w = 2.0 * math.pi / L
    k = jnp.arange(1, M + 1, dtype=jnp.float32)            # [M]
    enc = jnp.concatenate(
        [t, jnp.ones_like(t), jnp.cos(k * w * x), jnp.sin(k * w * x)], axis=-1)
    (w0, b0), (w1, b1), (w2, b2) = params
    h = jnp.tanh(enc @ w0.T + b0.T)
    h = jnp.tanh(h @ w1.T + b1.T)
    return h @ w2.T + b2.T


if __name__ == "__main__":
    # DNN(layers=[2+2M, 32, 32, 1], activation='tanh', L=1.0, M=1)
    L, M = 1.0, 1
    layers = [2 + 2 * M, 32, 32, 1]
    batch = 8

    key = jax.random.PRNGKey(0)
    key, kin = jax.random.split(key)
    inp = jax.random.normal(kin, (batch, 2), jnp.float32)   # [:,0]=t, [:,1]=x
    params = init_params(key, layers)

    # f32 path, small batch (single 128-lane tile).
    out = jax.block_until_ready(dnn_forward(inp, params, L=L, M=M))
    ref = reference_forward(inp, params, L=L, M=M)
    assert out.shape == (batch, 1)
    assert jnp.allclose(out, ref, atol=1e-5, rtol=1e-5), "f32 mismatch vs reference"

    # Multi-tile path with default (large) block_rows: ceil(N/2) cap -> 2 tiles on v7x.
    key, k2 = jax.random.split(key)
    inp2 = jax.random.normal(k2, (300, 2), jnp.float32)
    out2 = jax.block_until_ready(dnn_forward(inp2, params, L=L, M=M))
    ref2 = reference_forward(inp2, params, L=L, M=M)
    assert out2.shape == (300, 1)
    assert jnp.allclose(out2, ref2, atol=1e-5, rtol=1e-5), "2-tile mismatch vs reference"

    # Forced small tile (exercises >2 grid steps + tail padding).
    out2b = jax.block_until_ready(dnn_forward(inp2, params, L=L, M=M, block_rows=128))
    assert jnp.allclose(out2b, ref2, atol=1e-5, rtol=1e-5), "multi-tile mismatch vs reference"

    # bf16 MXU-input path (f32 accumulation / elementwise) — looser tolerance by design.
    out3 = jax.block_until_ready(
        dnn_forward(inp, params, L=L, M=M, compute_dtype=jnp.bfloat16))
    assert jnp.allclose(out3, ref, atol=5e-2, rtol=5e-2), "bf16 mismatch vs reference"

    # M=2 configuration (exercises the fused Fourier/layer-0 loop with multiple modes).
    layers_m2 = [2 + 2 * 2, 32, 32, 1]
    key, kp2 = jax.random.split(key)
    params_m2 = init_params(kp2, layers_m2)
    out4 = jax.block_until_ready(dnn_forward(inp, params_m2, L=0.5, M=2))
    ref4 = reference_forward(inp, params_m2, L=0.5, M=2)
    assert jnp.allclose(out4, ref4, atol=1e-5, rtol=1e-5), "M=2 mismatch vs reference"

    print("KERNEL_OK")
</pallas_src>

<mosaic_0001>
module attributes {stable_mosaic.version = 11 : i64} {
  func.func @_dnn_kernel(%arg0: i32, %arg1: memref<2x128xf32, #tpu.memory_space<vmem>>, %arg2: memref<32x4xf32, #tpu.memory_space<vmem>>, %arg3: memref<32x1xf32, #tpu.memory_space<vmem>>, %arg4: memref<32x32xf32, #tpu.memory_space<vmem>>, %arg5: memref<32x1xf32, #tpu.memory_space<vmem>>, %arg6: memref<1x32xf32, #tpu.memory_space<vmem>>, %arg7: memref<1x1xf32, #tpu.memory_space<vmem>>, %arg8: memref<1x128xf32, #tpu.memory_space<vmem>>) attributes {dimension_semantics = [#tpu.dimension_semantics<parallel>], iteration_bounds = array<i64: 1>, scalar_prefetch = 0 : i64, scratch_operands = 0 : i64, tpu.core_type = #tpu.core_type<tc>, window_params = [{transform_indices = @transform_0, window_bounds = array<i64: 2, 128>}, {pipeline_mode = #tpu.pipeline_mode<synchronous>, transform_indices = @transform_1, window_bounds = array<i64: 32, 4>}, {pipeline_mode = #tpu.pipeline_mode<synchronous>, transform_indices = @transform_2, window_bounds = array<i64: 32, 1>}, {pipeline_mode = #tpu.pipeline_mode<synchronous>, transform_indices = @transform_3, window_bounds = array<i64: 32, 32>}, {pipeline_mode = #tpu.pipeline_mode<synchronous>, transform_indices = @transform_4, window_bounds = array<i64: 32, 1>}, {pipeline_mode = #tpu.pipeline_mode<synchronous>, transform_indices = @transform_5, window_bounds = array<i64: 1, 32>}, {pipeline_mode = #tpu.pipeline_mode<synchronous>, transform_indices = @transform_6, window_bounds = array<i64: 1, 1>}, {transform_indices = @transform_7, window_bounds = array<i64: 1, 128>}]} {
    %c0 = arith.constant 0 : index
    %c0_0 = arith.constant 0 : index
    %0 = vector.load %arg1[%c0, %c0_0] : memref<2x128xf32, #tpu.memory_space<vmem>>, vector<1x128xf32>
    %c1 = arith.constant 1 : index
    %c0_1 = arith.constant 0 : index
    %1 = vector.load %arg1[%c1, %c0_1] : memref<2x128xf32, #tpu.memory_space<vmem>>, vector<1x128xf32>
    %c0_2 = arith.constant 0 : index
    %c0_3 = arith.constant 0 : index
    %2 = vector.load %arg2[%c0_2, %c0_3] : memref<32x4xf32, #tpu.memory_space<vmem>>, vector<32x1xf32>
    %3 = vector.broadcast %2 : vector<32x1xf32> to vector<32x128xf32>
    %4 = vector.broadcast %0 : vector<1x128xf32> to vector<32x128xf32>
    %5 = arith.mulf %3, %4 : vector<32x128xf32>
    %c0_4 = arith.constant 0 : index
    %c1_5 = arith.constant 1 : index
    %6 = vector.load %arg2[%c0_4, %c1_5] : memref<32x4xf32, #tpu.memory_space<vmem>>, vector<32x1xf32>
    %c0_6 = arith.constant 0 : index
    %c0_7 = arith.constant 0 : index
    %7 = vector.load %arg3[%c0_6, %c0_7] : memref<32x1xf32, #tpu.memory_space<vmem>>, vector<32x1xf32>
    %8 = arith.addf %6, %7 : vector<32x1xf32>
    %9 = vector.broadcast %8 : vector<32x1xf32> to vector<32x128xf32>
    %10 = arith.addf %5, %9 : vector<32x128xf32>
    %cst = arith.constant 6.28318548 : f32
    %11 = vector.broadcast %cst : f32 to vector<1x128xf32>
    %12 = arith.mulf %11, %1 : vector<1x128xf32>
    %c0_8 = arith.constant 0 : index
    %c2 = arith.constant 2 : index
    %13 = vector.load %arg2[%c0_8, %c2] : memref<32x4xf32, #tpu.memory_space<vmem>>, vector<32x1xf32>
    %14 = math.cos %12 : vector<1x128xf32>
    %15 = vector.broadcast %13 : vector<32x1xf32> to vector<32x128xf32>
    %16 = vector.broadcast %14 : vector<1x128xf32> to vector<32x128xf32>
    %17 = arith.mulf %15, %16 : vector<32x128xf32>
    %18 = arith.addf %10, %17 : vector<32x128xf32>
    %c0_9 = arith.constant 0 : index
    %c3 = arith.constant 3 : index
    %19 = vector.load %arg2[%c0_9, %c3] : memref<32x4xf32, #tpu.memory_space<vmem>>, vector<32x1xf32>
    %20 = math.sin %12 : vector<1x128xf32>
    %21 = vector.broadcast %19 : vector<32x1xf32> to vector<32x128xf32>
    %22 = vector.broadcast %20 : vector<1x128xf32> to vector<32x128xf32>
    %23 = arith.mulf %21, %22 : vector<32x128xf32>
    %24 = arith.addf %18, %23 : vector<32x128xf32>
    %25 = math.tanh %24 : vector<32x128xf32>
    %c0_10 = arith.constant 0 : index
    %c0_11 = arith.constant 0 : index
    %26 = vector.load %arg4[%c0_10, %c0_11] : memref<32x32xf32, #tpu.memory_space<vmem>>, vector<32x32xf32>
    %cst_12 = arith.constant dense<0.000000e+00> : vector<32x128xf32>
    %27 = tpu.matmul %26, %25, %cst_12 {dimension_numbers = #tpu.dot_dimension_numbers<[1], [0], [0], [1], [0, 0, 1, 1], [], []>} : vector<32x32xf32>, vector<32x128xf32>, vector<32x128xf32> -> vector<32x128xf32>
    %c0_13 = arith.constant 0 : index
    %c0_14 = arith.constant 0 : index
    %28 = vector.load %arg5[%c0_13, %c0_14] : memref<32x1xf32, #tpu.memory_space<vmem>>, vector<32x1xf32>
    %29 = vector.broadcast %28 : vector<32x1xf32> to vector<32x128xf32>
    %30 = arith.addf %27, %29 : vector<32x128xf32>
    %31 = math.tanh %30 : vector<32x128xf32>
    %c0_15 = arith.constant 0 : index
    %c0_16 = arith.constant 0 : index
    %32 = vector.load %arg6[%c0_15, %c0_16] : memref<1x32xf32, #tpu.memory_space<vmem>>, vector<1x32xf32>
    %cst_17 = arith.constant dense<0.000000e+00> : vector<1x128xf32>
    %33 = tpu.matmul %32, %31, %cst_17 {dimension_numbers = #tpu.dot_dimension_numbers<[1], [0], [0], [1], [0, 0, 1, 1], [], []>} : vector<1x32xf32>, vector<32x128xf32>, vector<1x128xf32> -> vector<1x128xf32>
    %c0_18 = arith.constant 0 : index
    %c0_19 = arith.constant 0 : index
    %34 = vector.load %arg7[%c0_18, %c0_19] : memref<1x1xf32, #tpu.memory_space<vmem>>, vector<1x1xf32>
    %35 = vector.broadcast %34 : vector<1x1xf32> to vector<1x128xf32>
    %36 = arith.addf %33, %35 : vector<1x128xf32>
    %c0_20 = arith.constant 0 : index
    %c0_21 = arith.constant 0 : index
    %37 = vector.load %arg8[%c0_20, %c0_21] : memref<1x128xf32, #tpu.memory_space<vmem>>, vector<1x128xf32>
    tpu.vector_store %arg8[%c0_20, %c0_21], %36 {strides = array<i32>} : memref<1x128xf32, #tpu.memory_space<vmem>>, vector<1x128xf32>,
    return
  }
  func.func @transform_0(%arg0: i32) -> (i32, i32) {
    %c0_i32 = arith.constant 0 : i32
    %c0_i32_0 = arith.constant 0 : i32
    return %c0_i32, %arg0 : i32, i32
  }
  func.func @transform_1(%arg0: i32) -> (i32, i32) {
    %c0_i32 = arith.constant 0 : i32
    %c0_i32_0 = arith.constant 0 : i32
    %c0_i32_1 = arith.constant 0 : i32
    return %c0_i32, %c0_i32_0 : i32, i32
  }
  func.func @transform_2(%arg0: i32) -> (i32, i32) {
    %c0_i32 = arith.constant 0 : i32
    %c0_i32_0 = arith.constant 0 : i32
    %c0_i32_1 = arith.constant 0 : i32
    return %c0_i32, %c0_i32_0 : i32, i32
  }
  func.func @transform_3(%arg0: i32) -> (i32, i32) {
    %c0_i32 = arith.constant 0 : i32
    %c0_i32_0 = arith.constant 0 : i32
    %c0_i32_1 = arith.constant 0 : i32
    return %c0_i32, %c0_i32_0 : i32, i32
  }
  func.func @transform_4(%arg0: i32) -> (i32, i32) {
    %c0_i32 = arith.constant 0 : i32
    %c0_i32_0 = arith.constant 0 : i32
    %c0_i32_1 = arith.constant 0 : i32
    return %c0_i32, %c0_i32_0 : i32, i32
  }
  func.func @transform_5(%arg0: i32) -> (i32, i32) {
    %c0_i32 = arith.constant 0 : i32
    %c0_i32_0 = arith.constant 0 : i32
    %c0_i32_1 = arith.constant 0 : i32
    return %c0_i32, %c0_i32_0 : i32, i32
  }
  func.func @transform_6(%arg0: i32) -> (i32, i32) {
    %c0_i32 = arith.constant 0 : i32
    %c0_i32_0 = arith.constant 0 : i32
    %c0_i32_1 = arith.constant 0 : i32
    return %c0_i32, %c0_i32_0 : i32, i32
  }
  func.func @transform_7(%arg0: i32) -> (i32, i32) {
    %c0_i32 = arith.constant 0 : i32
    %c0_i32_0 = arith.constant 0 : i32
    return %c0_i32, %arg0 : i32, i32
  }
}

</mosaic_0001>

<bundles_post_ra>
// kernel: _dnn_forward_jit.1
= control target key start
LH: loop header
LB: loop body
LE: loop exit
PB: predicated region body
PF: predicated region fallthrough
CT: control target
= control target key end

     0   :  { %v715_v2 = vmov 0   ;;  %s716_s28 = smov 1   ;;  %v717_v8 = vmov 2   ;;  %v718_v9 = vmov 3   ;;  %v719_v11 = vmov 1   ;;  %s908_s2 = inlined_call_operand.vmem [shape: f32[32,1], index: 2, kind: input, shape index: {}]   ;;  %s909_s1 = inlined_call_operand.vmem [shape: f32[32,4], index: 1, kind: input, shape index: {}]   ;;  %s910_s0 = inlined_call_operand.vmem [shape: f32[2,128], index: 0, kind: input, shape index: {}]   ;;  %s911_s3 = inlined_call_operand.vmem [shape: f32[32,32], index: 3, kind: input, shape index: {}]   ;;  %s912_s4 = inlined_call_operand.vmem [shape: f32[32,1], index: 4, kind: input, shape index: {}]   ;;  %s913_s6 = inlined_call_operand.<no memory space> [shape: f32[1,1], index: 6, kind: input, shape index: {}]   ;;  %s914_s5 = inlined_call_operand.vmem [shape: f32[1,32], index: 5, kind: input, shape index: {}]   ;;  %s915_s7 = inlined_call_operand.vmem [shape: f32[1,128], index: 7, kind: output, shape index: {}]  }
   0x1   :  { %v62_v0 = vld [vmem:[%s908_s2] sm:$0xff]  ;;  %v64_v1 = vld [vmem:[%s908_s2 + $0x10] sm:$0xff]  ;;  %682 = vset.pattern.permute.xlu1 %v715_v2  ;;  %681 = vset.pattern.permute.xlu0 %v715_v2  ;;  %v63_v3 = vld [vmem:[%s908_s2 + $0x8] sm:$0xff]  ;;  %v720_v21 = vmov 2102212464   ;;  %vm406_vm6 = vcmask 261120  }
   0x2   :  { %70 = vrot.lane.b32.xlu0 %v62_v0, %s716_s28  ;;  %74 = vrot.lane.b32.xlu1 %v64_v1, %s716_s28  ;;  %v65_v4 = vld [vmem:[%s908_s2 + $0x18] sm:$0xff]  ;;  %v786_v5 = vld [vmem:[%s909_s1 + $0x8] sm:$0xff]  ;;  %v721_v23 = vmov 920167782   ;;  %v722_v28 = vmov 1326507024  }
   0x3   :  { %v791_v6 = vld [vmem:[%s909_s1] sm:$0xff]  ;;  %v798_v7 = vld [vmem:[%s909_s1 + $0x10] sm:$0xff]  ;;  %v808_v10 = vld [vmem:[%s909_s1 + $0x18] sm:$0xff]  ;;  %v723_v30 = vmov 683565275  }
   0x4   :  { %v29_v12 = vld [vmem:[%s910_s0 + $0x1] sm:$0x1]  ;;  %v724_v32 = vmov 2475754826   ;;  %v725_v35 = vmov 2131351028  }
   0x5   :  { %v819_v13 = vmul.f32 6.2831855, %v29_v12 }
   0x6   :  { %72 = vrot.lane.b32.xlu0 %v63_v3, %s716_s28  ;;  %76 = vrot.lane.b32.xlu1 %v65_v4, %s716_s28 }
   0x7   :  { %v114_v14 = vand.u32 2139095040, %v819_v13  ;;  %v111_v25 = vand.u32 2147483647, %v819_v13  ;;  %vm113_vm8 = vcmp.lt.s32.totalorder %v819_v13, 0 }
   0x9   :  { %v115_v15 = vshrl.u32 %v114_v14, 23  ;;  %v118_v40 = vand.u32 8388607, %v111_v25  ;;  %vm112_vm9 = vcmp.le.f32.partialorder %v111_v25, 0.7853982 }
   0xa   :  { %41 = vperm.xlu1 %682, %v786_v5   ;;  %36 = vperm.xlu0 %681, %v791_v6  }
   0xb   :  { %v598_v16 = vadd.s32 4294967169, %v115_v15  ;;  %v119_v49 = vor.u32 8388608, %v118_v40 }
   0xd   :  { %v121_v17 = vadd.s32 1, %v598_v16  ;;  %v159_v59 = vshll.u32 %v119_v49, 8 }
   0xe   :  { %683 = vset.pattern.permute.xlu1 %v717_v8  ;;  %46 = vperm.xlu0 %681, %v798_v7  }
   0xf   :  { %215 = vperm.xlu1 %683, %v791_v6   ;;  %vm122_vm0 = vcmp.gt.s32.totalorder %v121_v17, 0 }
  0x10   :  { %v123_v18 = vsel %vm122_vm0, %v121_v17, 0  ;;  %vm203_vm0 = vweird.f32 %v819_v13 }
  0x11   :  { %v125_v19 = vand.u32 31, %v123_v18  ;;  %v124_v26 = vshrl.u32 %v123_v18, 5 }
  0x12   :  { %686 = vset.pattern.permute.xlu0 %v718_v9 }
  0x13   :  { %219 = vperm.xlu1 %683, %v786_v5   ;;  %351 = vperm.xlu0 %686, %v786_v5   ;;  %v126_v20 = vsub.s32 32, %v125_v19  ;;  %v137_v22 = vshll.u32 %v720_v21, %v125_v19  ;;  %v140_v27 = vshll.u32 %v721_v23, %v125_v19  ;;  %v128_v31 = vshll.u32 %v723_v30, %v125_v19 }
  0x14   :  { %v131_v33 = vshll.u32 %v724_v32, %v125_v19  ;;  %v134_v37 = vshll.u32 %v725_v35, %v125_v19  ;;  %vm146_vm1 = vcmp.lt.s32.totalorder %v124_v26, 4  ;;  %vm143_vm2 = vcmp.lt.s32.totalorder %v124_v26, 1  ;;  %v382_v19 = vld [vmem:[%s912_s4] sm:$0xff] }
  0x15   :  { %v138_v24 = vshrl.u32 %v721_v23, %v126_v20  ;;  %v141_v29 = vshrl.u32 %v722_v28, %v126_v20  ;;  %v129_v34 = vshrl.u32 %v724_v32, %v126_v20  ;;  %v132_v36 = vshrl.u32 %v725_v35, %v126_v20 }
  0x16   :  { %v135_v38 = vshrl.u32 %v720_v21, %v126_v20  ;;  %vm145_vm3 = vcmp.lt.s32.totalorder %v124_v26, 3  ;;  %vm144_vm4 = vcmp.lt.s32.totalorder %v124_v26, 2  ;;  %v127_v1 = vshrl.u32 %v723_v30, %v126_v20  ;;  %v384_v20 = vld [vmem:[%s912_s4 + $0x10] sm:$0xff] }
  0x17   :  { %684 = vset.pattern.permute.xlu1 %v715_v2  ;;  %687 = vset.pattern.permute.xlu0 %v717_v8  ;;  %v139_v39 = vor.u32 %v138_v24, %v137_v22  ;;  %v142_v41 = vor.u32 %v141_v29, %v140_v27  ;;  %v130_v42 = vor.u32 %v129_v34, %v128_v31  ;;  %v383_v22 = vld [vmem:[%s912_s4 + $0x8] sm:$0xff]  ;;  %v385_v24 = vld [vmem:[%s912_s4 + $0x18] sm:$0xff] }
  0x18   :  { %51 = vperm.xlu1 %684, %v808_v10   ;;  %223 = vperm.xlu0 %687, %v798_v7   ;;  %v133_v43 = vor.u32 %v132_v36, %v131_v33  ;;  %v136_v44 = vor.u32 %v135_v38, %v134_v37 }
  0x19   :  { %v152_v47 = vsel %vm146_vm1, %v139_v39, 920167782  ;;  %v156_v50 = vsel %vm146_vm1, %v142_v41, 1326507024 }
  0x1a   :  { %v151_v52 = vsel %vm143_vm2, %v130_v42, %v133_v43  ;;  %v153_v53 = vsel %vm145_vm3, %v136_v44, %v152_v47  ;;  %v155_v56 = vsel %vm143_vm2, %v133_v43, %v136_v44  ;;  %v157_v57 = vsel %vm145_vm3, %v139_v39, %v156_v50 }
  0x1b   :  { %v154_v60 = vsel %vm144_vm4, %v151_v52, %v153_v53  ;;  %v158_v62 = vsel %vm144_vm4, %v155_v56, %v157_v57 }
  0x1c   :  { %685 = vset.pattern.permute.xlu1 %v718_v9  ;;  %690 = vset.pattern.permute.xlu0 %v719_v11  ;;  %v837_v63 = vmul.u32.u64.low %v159_v59, %v154_v60  ;;  %v838_v0 = vmul.u32.u64.high %v159_v59, %v154_v60, %v837_v63  ;;  %v840_v3 = vmul.u32.u64.low %v159_v59, %v158_v62  ;;  %v841_v4 = vmul.u32.u64.high %v159_v59, %v158_v62, %v840_v3 }
  0x1d   :  { %347 = vperm.xlu1 %685, %v791_v6  }
  0x1e   :  { %v169_v12 = vadd.s32 1, %v838_v0  ;;  %vm168_vm5 = vc.u32 %v841_v4, %v837_v63  ;;  %v167_v31 = vadd.s32 %v837_v63, %v841_v4 }
  0x21   :  { %688 = vset.pattern.permute.xlu1 %v717_v8 }
  0x22   :  { %227 = vperm.xlu1 %688, %v808_v10  }
  0x26   :  { %689 = vset.pattern.permute.xlu1 %v719_v11 }
  0x74   :  { %v71_v45 = vpop.permute.xlu0 %70  ;;  %v75_v46 = vpop.permute.xlu1 %74 }
  0x75   :  { %v82_v48 = vadd.f32 %v71_v45, %v791_v6  ;;  %v84_v51 = vadd.f32 %v75_v46, %v798_v7  ;;  %v147_v6 = vsel %vm143_vm2, %v127_v1, %v130_v42 }
  0x77   :  { %88 = vperm.xlu1 %689, %v82_v48  }
  0x78   :  { %v73_v54 = vpop.permute.xlu0 %72  ;;  %v77_v55 = vpop.permute.xlu1 %76 }
  0x79   :  { %v83_v58 = vadd.f32 %v73_v54, %v786_v5  ;;  %v85_v61 = vadd.f32 %v77_v55, %v808_v10  ;;  %v148_v5 = vsel %vm146_vm1, %v136_v44, 2102212464  ;;  %vm727_vm1 = vmmov 0  }
  0x7a   :  { %v149_v8 = vsel %vm145_vm3, %v133_v43, %v148_v5 }
  0x7b   :  { %93 = vperm.xlu0 %690, %v83_v58   ;;  %98 = vperm.xlu1 %689, %v84_v51   ;;  %v150_v11 = vsel %vm144_vm4, %v147_v6, %v149_v8 }
  0x7c   :  { %v166_v14 = vmul.u32 %v159_v59, %v150_v11  ;;  %v230_v59 = vlaneseq }
  0x7f   :  { %103 = vperm.xlu1 %689, %v85_v61   ;;  %692 = vset.pattern.permute.xlu0 %v718_v9 }
  0x80   :  { %359 = vperm.xlu0 %692, %v808_v10   ;;  %v170_v10 = vsel %vm168_vm5, %v169_v12, %v838_v0  ;;  %v231_v0 = vshrl.u32 %v230_v59, 7 }
  0x81   :  { %v171_v15 = vadd.s32 %v170_v10, %v166_v14 }
  0x82   :  { %v881_v6 = vsub.s32 0, %v231_v0 }
  0x83   :  { %691 = vset.pattern.permute.xlu1 %v718_v9  ;;  %v172_v16 = vadd.s32 536870912, %v171_v15 }
  0x84   :  { %355 = vperm.xlu1 %691, %v798_v7   ;;  %694 = vset.pattern.permute.xlu0 %v715_v2  ;;  %v378_v7 = vld [vmem:[%s911_s3] sm:$0xff] }
  0x85   :  { %v173_v17 = vshrl.u32 %v172_v16, 30  ;;  %632 = vmatprep.mubr.msk.f32.mxu0 %vm406_vm6, %v378_v7  ;;  %398 = vperm.xlu0 %694, %v384_v20  }
  0x87   :  { %v174_v9 = vshll.u32 %v173_v17, 30  ;;  %v197_v46 = vsub.s32 4, %v173_v17 }
  0x88   :  { %693 = vset.pattern.permute.xlu1 %v715_v2  ;;  %v12_v2 = vstv %s913_s6 }
  0x89   :  { %v175_v18 = vsub.s32 %v171_v15, %v174_v9  ;;  %388 = vperm.xlu1 %693, %v382_v19   ;;  %13 = vst [vmem:[#allocation2] sm:$0x1] %v12_v2  ;;  %v42_v44 = vpop.permute.xlu1 %41  ;;  %v198_v48 = vsel %vm113_vm8, %v197_v46, %v173_v17  ;;  %v37_v55 = vpop.permute.xlu0 %36  ;;  %v597_v15 = vld [vmem:[%s910_s0] ss:$0 sm:$0xff] }
  0x8a   :  { %v200_v49 = vsel %vm112_vm9, 0, %v198_v48  ;;  %v58_v17 = vmul.f32 %v597_v15, %v37_v55  ;;  %v59_v19 = vmul.f32 %v597_v15, %v42_v44  ;;  %v728_v55 = vmov 0.0  }
  0x8b   :  { %v177_v21 = vsub.s32 0, %v175_v18  ;;  %v335_v51 = vadd.s32 3, %v200_v49  ;;  %v204_v54 = vand.u32 3, %v200_v49  ;;  %646 = vmatprep.mubr.msk.f32.mxu1 %vm727_vm1, %v728_v55 }
  0x8d   :  { %393 = vperm.xlu1 %693, %v383_v22   ;;  %v599_v23 = vmin.u32 %v177_v21, %v175_v18  ;;  %v336_v57 = vand.u32 3, %v335_v51  ;;  %vm206_vm10 = vcmp.eq.s32.totalorder %v204_v54, 0  ;;  %vm209_vm11 = vcmp.eq.s32.totalorder %v204_v54, 2  ;;  %v47_v62 = vpop.permute.xlu0 %46  ;;  %v379_v51 = vld [vmem:[%s911_s3 + $0x8] sm:$0xff] }
  0x8e   :  { %v216_v47 = vpop.permute.xlu1 %215  ;;  %vm205_vm14 = vcmp.lt.s32.totalorder %v204_v54, 2  ;;  %v60_v2 = vmul.f32 %v597_v15, %v47_v62  ;;  %v726_v54 = vmov 0.0|0.0  }
  0x8f   :  { %v179_v26 = vclz %v599_v23  ;;  %vm338_vm12 = vcmp.eq.s32.totalorder %v336_v57, 0  ;;  %vm341_vm13 = vcmp.eq.s32.totalorder %v336_v57, 2  ;;  %vm337_vm15 = vcmp.lt.s32.totalorder %v336_v57, 2  ;;  %657 = vmatprep.subr.bf16.mxu1 %v726_v54 }
  0x90   :  { %v509_v27 = vld [vmem:[#allocation2] sm:$0x1] }
  0x91   :  { %403 = vperm.xlu1 %693, %v385_v24   ;;  %v600_v28 = vadd.s32 4294967294, %v179_v26 }
  0x92   :  { %v220_v50 = vpop.permute.xlu1 %219  ;;  %v352_v5 = vpop.permute.xlu0 %351 }
  0x93   :  { %vm601_vm7 = vcmp.lt.s32.totalorder %v600_v28, 0 }
  0x94   :  { %v182_v29 = vsel %vm601_vm7, 0, %v600_v28 }
  0x95   :  { %512 = vperm.xlu1 %693, %v509_v27   ;;  %v187_v30 = vsub.s32 4294967266, %v182_v29  ;;  %v183_v32 = vsub.s32 32, %v182_v29  ;;  %v184_v34 = vshll.u32 %v175_v18, %v182_v29 }
  0x97   :  { %v188_v33 = vadd.s32 127, %v187_v30  ;;  %v185_v35 = vshrl.u32 %v167_v31, %v183_v32  ;;  %v52_v56 = vpop.permute.xlu1 %51  ;;  %v224_v16 = vpop.permute.xlu0 %223 }
  0x98   :  { %v61_v30 = vmul.f32 %v597_v15, %v52_v56 }
  0x99   :  { %v189_v36 = vshll.u32 %v188_v33, 23  ;;  %v186_v37 = vor.u32 %v185_v35, %v184_v34 }
  0x9b   :  { %v190_v38 = vor.u32 4788187, %v189_v36  ;;  %v193_v40 = vcvt.s32.f32 %v186_v37 }
  0x9c   :  { %v348_v63 = vpop.permute.xlu1 %347 }
  0x9d   :  { %v191_v39 = vand.u32 2147483647, %v190_v38 }
  0x9f   :  { %v194_v41 = vmul.f32 %v193_v40, %v191_v39 }
  0xa1   :  { %v195_v42 = vxor.u32 2147483648, %v194_v41  ;;  %v228_v12 = vpop.permute.xlu1 %227 }
  0xa3   :  { %v196_v43 = vsel %vm113_vm8, %v195_v42, %v194_v41 }
  0xa4   :  { %v199_v45 = vsel %vm112_vm9, %v819_v13, %v196_v43 }
  0xa5   :  { %695 = vcosq.f32 %v199_v45 }
  0xa6   :  { %697 = vsinq.f32 %v199_v45 }
  0xaf   :  { %v696_v52 = vpop.eup %695 }
  0xb0   :  { %v698_v53 = vpop.eup %697  ;;  %v210_v25 = vxor.u32 2147483648, %v696_v52 }
  0xb1   :  { %v207_v58 = vxor.u32 2147483648, %v698_v53 }
  0xb2   :  { %v211_v61 = vsel %vm209_vm11, %v210_v25, %v698_v53  ;;  %v343_v3 = vsel %vm341_vm13, %v210_v25, %v698_v53  ;;  %v381_v53 = vld [vmem:[%s911_s3 + $0x18] sm:$0xff] }
  0xb3   :  { %v208_v60 = vsel %vm206_vm10, %v696_v52, %v207_v58  ;;  %v340_v1 = vsel %vm338_vm12, %v696_v52, %v207_v58  ;;  %v380_v52 = vld [vmem:[%s911_s3 + $0x10] sm:$0xff] }
  0xb4   :  { %v212_v4 = vsel %vm205_vm14, %v208_v60, %v211_v61  ;;  %v344_v8 = vsel %vm337_vm15, %v340_v1, %v343_v3 }
  0xb5   :  { %v213_v11 = vsel %vm203_vm0, nan, %v212_v4  ;;  %v345_v14 = vsel %vm203_vm0, nan, %v344_v8 }
  0xb6   :  { %v233_v10 = vrot.slane %v213_v11, %v881_v6  ;;  %v365_v7 = vrot.slane %v345_v14, %v881_v6 }
  0xb8   :  { %v234_v13 = vmul.f32 %v233_v10, %v216_v47  ;;  %v366_v20 = vmul.f32 %v365_v7, %v348_v63  ;;  %v235_v22 = vmul.f32 %v233_v10, %v220_v50  ;;  %v236_v26 = vmul.f32 %v233_v10, %v224_v16 }
  0xb9   :  { %v367_v31 = vmul.f32 %v365_v7, %v352_v5  ;;  %v237_v35 = vmul.f32 %v233_v10, %v228_v12  ;;  %v508_v10 = vld [vmem:[%s914_s5] sm:$0x1] }
  0xf6   :  { %v89_v9 = vpop.permute.xlu1 %88 }
  0xf7   :  { %v106_v18 = vadd.f32 %v89_v9, %v58_v17 }
  0xf9   :  { %v238_v21 = vadd.f32 %v234_v13, %v106_v18 }
  0xfa   :  { %v94_v23 = vpop.permute.xlu0 %93  ;;  %v99_v24 = vpop.permute.xlu1 %98 }
  0xfb   :  { %v370_v27 = vadd.f32 %v366_v20, %v238_v21  ;;  %v107_v28 = vadd.f32 %v94_v23, %v59_v19  ;;  %v108_v29 = vadd.f32 %v99_v24, %v60_v2 }
  0xfd   :  { %v239_v32 = vadd.f32 %v235_v22, %v107_v28  ;;  %v240_v33 = vadd.f32 %v236_v26, %v108_v29  ;;  %699 = vtanh.f32 %v370_v27 }
  0xfe   :  { %v104_v34 = vpop.permute.xlu1 %103 }
  0xff   :  { %v371_v36 = vadd.f32 %v367_v31, %v239_v32  ;;  %v109_v37 = vadd.f32 %v104_v34, %v61_v30  ;;  %v360_v38 = vpop.permute.xlu0 %359 }
 0x100   :  { %v369_v39 = vmul.f32 %v365_v7, %v360_v38 }
 0x101   :  { %701 = vtanh.f32 %v371_v36  ;;  %v241_v40 = vadd.f32 %v237_v35, %v109_v37 }
 0x103   :  { %v373_v41 = vadd.f32 %v369_v39, %v241_v40  ;;  %v356_v42 = vpop.permute.xlu1 %355 }
 0x104   :  { %v368_v43 = vmul.f32 %v365_v7, %v356_v42  ;;  %v399_v61 = vpop.permute.xlu0 %398 }
 0x105   :  { %703 = vtanh.f32 %v373_v41 }
 0x106   :  { %v372_v44 = vadd.f32 %v368_v43, %v240_v33 }
 0x107   :  { %v700_v45 = vpop.eup %699 }
 0x108   :  { %705 = vtanh.f32 %v372_v44  ;;  %v389_v56 = vpop.permute.xlu1 %388 }
 0x10b   :  { %v702_v46 = vpop.eup %701 }
 0x10c   :  { %v649_v47 = vpack.c.bf16 %v702_v46, %v700_v45  ;;  %v394_v57 = vpop.permute.xlu1 %393 }
 0x10e   :  { %650 = vmatprep.subr.bf16.mxu0 %v649_v47 }
 0x10f   :  { %652 = vmatpush3.bf16.msra.mxu0 %v649_v47  ;;  %v704_v48 = vpop.eup %703 }
 0x110   :  { %v404_v62 = vpop.permute.xlu1 %403 }
 0x112   :  { %v706_v49 = vpop.eup %705 }
 0x113   :  { %v653_v50 = vpack.c.bf16 %v704_v48, %v706_v49 }
 0x114   :  { %v513_v15 = vpop.permute.xlu1 %512 }
 0x115   :  { %654 = vmatprep.subr.bf16.mxu0 %v653_v50  ;;  %v518_v16 = vrot.slane %v513_v15, %v881_v6 }
 0x116   :  { %656 = vmatpush3.bf16.msra.mxu0 %v653_v50 }
 0x119   :  { %633 = vmatmul.mubr.msk.f32.vlgmr.msra.gmra.mrb[0].mxu0 %vm406_vm6, %v379_v51 }
 0x11a   :  { %635 = vmatprep.mubr.msk.f32.mxu0 %vm406_vm6, %v380_v52 }
 0x11d   :  { %636 = vmatmul.mubr.msk.f32.gmra.mrb[2].mxu0 %vm406_vm6, %v381_v53 }
 0x1ec   :  { %v634_v58 = vpop.f32.mrb[0].mxu0 }
 0x1ed   :  { %v491_v25 = vadd.f32 %v634_v58, %v394_v57  ;;  %v485_v59 = vpop.f32.mrb[1].mxu0 }
 0x1ee   :  { %v486_v60 = vadd.f32 %v485_v59, %v389_v56 }
 0x1ef   :  { %707 = vtanh.f32 %v491_v25 }
 0x1f0   :  { %709 = vtanh.f32 %v486_v60  ;;  %v637_v63 = vpop.f32.mrb[2].mxu0 }
 0x1f1   :  { %v501_v0 = vadd.f32 %v637_v63, %v404_v62  ;;  %v495_v1 = vpop.f32.mrb[3].mxu0 }
 0x1f2   :  { %v496_v3 = vadd.f32 %v495_v1, %v399_v61 }
 0x1f3   :  { %711 = vtanh.f32 %v501_v0 }
 0x1f4   :  { %713 = vtanh.f32 %v496_v3 }
 0x1f9   :  { %v708_v4 = vpop.eup %707 }
 0x1fa   :  { %v710_v5 = vpop.eup %709 }
 0x1fb   :  { %v658_v8 = vpack.c.bf16 %v708_v4, %v710_v5 }
 0x1fd   :  { %v712_v11 = vpop.eup %711  ;;  %659 = vmatpush3.bf16.msra.mxu1 %v658_v8 }
 0x1fe   :  { %v714_v12 = vpop.eup %713  ;;  %660 = vmatprep.subr.bf16.mxu1 %v726_v54 }
 0x1ff   :  { %v661_v14 = vpack.c.bf16 %v712_v11, %v714_v12 }
 0x201   :  { %662 = vmatpush3.bf16.msra.mxu1 %v661_v14 }
 0x204   :  { %647 = vmatmul.mubr.msk.f32.vlgmr.msra.gmra.mrb[0].mxu1 %vm406_vm6, %v508_v10 }
 0x2d7   :  { %v588_v17 = vpop.f32.mrb[0].mxu1 }
 0x2d8   :  { %v589_v7 = vadd.f32 %v588_v17, %v518_v16  ;;  %v648_v9 = vpop.f32.mrb[1].mxu1 }
 0x2da   :  { %592 = vst [vmem:[%s915_s7] sm:$0x1] %v589_v7 }

</bundles_post_ra>
